<compile_context>
chip_gen: v5e
topology: v5e:2x2
jax: 0.10.0
libtpu: 0.0.40
codegen_flags: <defaults>
</compile_context>

<pallas_src>
import jax
import jax.numpy as jnp
from jax.experimental import pallas as pl
from jax.experimental.pallas import tpu as pltpu


def _round_up(n, m):
    return ((n + m - 1) // m) * m


def qnet_kernel(xT_ref, w1_ref, b1_ref, w2_ref, b2_ref, o_ref):
    # xT_ref: (in_features, TB) f32 in VMEM, batch on the lane axis.
    # w1_ref: (hidden, in_features) VMEM (torch layout), b1_ref: (hidden, 1) VMEM.
    # w2_ref: (hidden,) SMEM scalars, b2_ref: (1,) SMEM scalar.
    in_features, tb = xT_ref.shape
    hidden = w1_ref.shape[0]

    xT = xT_ref[...]                                   # (in, TB)
    w1 = w1_ref[...]                                   # (hidden, in)

    # fcone + ReLU: 10 outer-product FMAs on the VPU (MXU would be <1% utilized).
    h = jnp.broadcast_to(b1_ref[...], (hidden, tb))    # (hidden, TB)
    for k in range(in_features):                       # fully unrolled, K = 10
        h = h + w1[:, k:k + 1] * xT[k:k + 1, :]        # (hidden,1)*(1,TB) -> (hidden,TB)
    h = jnp.maximum(h, 0.0)                            # ReLU

    # fctwo: 3 scalar FMAs, scalars come straight from SMEM (no VMEM tiles).
    y = jnp.full((1, tb), b2_ref[0], dtype=jnp.float32)
    for j in range(hidden):
        y = y + h[j:j + 1, :] * w2_ref[j]

    o_ref[...] = y                                     # lane-dense (1, TB) store


def qnet_forward(x, w1, b1, w2, b2, *, tb=8192):
    """x: (B, 10) like the torch module.  w1: (3,10), b1: (3,), w2: (3,), b2: (1,)."""
    x = jnp.asarray(x, jnp.float32)                    # mirrors torch.FloatTensor(x)
    B, in_features = x.shape
    hidden = w1.shape[0]

    # Lane-dense batch tile: multiple of 128, clamped so tiny batches use 1 tile.
    tb = max(128, min(int(tb), _round_up(B, 128)))
    tb = _round_up(tb, 128)
    Bp = _round_up(B, tb)
    num_tiles = Bp // tb

    # Batch goes on the lane (minor) axis.  Padding rows are zeros and are
    # sliced off below, so the partial last tile is always in range.
    # TODO(synk): if the producer can hand us x already transposed (10, B),
    # accept it directly and skip this extra HBM read+write of x.
    xT = jnp.pad(x, ((0, Bp - B), (0, 0))).T           # (in_features, Bp)

    w1 = jnp.asarray(w1, jnp.float32)                  # (hidden, in)
    b1_col = jnp.asarray(b1, jnp.float32).reshape(hidden, 1)
    w2 = jnp.asarray(w2, jnp.float32).reshape(hidden)
    b2 = jnp.asarray(b2, jnp.float32).reshape(1)

    yT = pl.pallas_call(
        qnet_kernel,
        out_shape=jax.ShapeDtypeStruct((1, Bp), jnp.float32),
        grid_spec=pltpu.PrefetchScalarGridSpec(
            num_scalar_prefetch=0,
            grid=(num_tiles,),
            in_specs=[
                # Activations: tiled over batch, double-buffered by the pipeline.
                pl.BlockSpec((in_features, tb), lambda i: (0, i)),
                # Tiny weights: constant block index -> VMEM-resident for the grid.
                pl.BlockSpec((hidden, in_features), lambda i: (0, 0)),
                pl.BlockSpec((hidden, 1), lambda i: (0, 0)),
                # Output-layer scalars live in SMEM.
                pl.BlockSpec(memory_space=pltpu.MemorySpace.SMEM),
                pl.BlockSpec(memory_space=pltpu.MemorySpace.SMEM),
            ],
            out_specs=pl.BlockSpec((1, tb), lambda i: (0, i)),
        ),
        compiler_params=pltpu.CompilerParams(
            dimension_semantics=("parallel",),         # shards tiles across TCs on v7x
        ),
    )(xT, w1, b1_col, w2, b2)

    return yT[0, :B][:, None]                          # back to torch-style (B, 1)


def init_params(key):
    # PyTorch-Linear-style uniform(-1/sqrt(fan_in), 1/sqrt(fan_in)) init,
    # stored in torch layout: w1 (out,in)=(3,10), b1 (3,), w2 (3,), b2 (1,).
    k1, k2, k3, k4 = jax.random.split(key, 4)
    bound1 = 1.0 / jnp.sqrt(10.0)
    bound2 = 1.0 / jnp.sqrt(3.0)
    w1 = jax.random.uniform(k1, (3, 10), jnp.float32, -bound1, bound1)
    b1 = jax.random.uniform(k2, (3,), jnp.float32, -bound1, bound1)
    w2 = jax.random.uniform(k3, (3,), jnp.float32, -bound2, bound2)   # fctwo.weight[0]
    b2 = jax.random.uniform(k4, (1,), jnp.float32, -bound2, bound2)
    return w1, b1, w2, b2


if __name__ == "__main__":
    key = jax.random.PRNGKey(0)
    kx, kp = jax.random.split(key)

    B = 300                                            # small, non-multiple of 128
    x = jax.random.normal(kx, (B, 10), jnp.float32)
    w1, b1, w2, b2 = init_params(kp)

    # tb=128 forces a 3-step grid at this small B, exercising tiling + padding.
    out = qnet_forward(x, w1, b1, w2, b2, tb=128)
    jax.block_until_ready(out)

    # Plain-JAX reference (same math as the torch module).
    ref = jnp.maximum(x @ w1.T + b1[None, :], 0.0) @ w2[:, None] + b2[None, :]
    assert out.shape == (B, 1)
    assert jnp.allclose(out, ref, atol=1e-5, rtol=1e-5), "mismatch vs reference"

    print("KERNEL_OK")
</pallas_src>

<mosaic_0001>
module attributes {stable_mosaic.version = 11 : i64} {
  func.func @qnet_kernel(%arg0: i32, %arg1: memref<10x128xf32, #tpu.memory_space<vmem>>, %arg2: memref<3x10xf32, #tpu.memory_space<vmem>>, %arg3: memref<3x1xf32, #tpu.memory_space<vmem>>, %arg4: memref<3xf32, #tpu.memory_space<smem>>, %arg5: memref<1xf32, #tpu.memory_space<smem>>, %arg6: memref<1x128xf32, #tpu.memory_space<vmem>>) attributes {dimension_semantics = [#tpu.dimension_semantics<parallel>], iteration_bounds = array<i64: 3>, scalar_prefetch = 0 : i64, scratch_operands = 0 : i64, tpu.core_type = #tpu.core_type<tc>, window_params = [{transform_indices = @transform_0, window_bounds = array<i64: 10, 128>}, {pipeline_mode = #tpu.pipeline_mode<synchronous>, transform_indices = @transform_1, window_bounds = array<i64: 3, 10>}, {pipeline_mode = #tpu.pipeline_mode<synchronous>, transform_indices = @transform_2, window_bounds = array<i64: 3, 1>}, {transform_indices = @transform_3, window_bounds = array<i64: 3>}, {transform_indices = @transform_4, window_bounds = array<i64: 1>}, {transform_indices = @transform_5, window_bounds = array<i64: 1, 128>}]} {
    %c0 = arith.constant 0 : index
    %c0_0 = arith.constant 0 : index
    %0 = vector.load %arg1[%c0, %c0_0] : memref<10x128xf32, #tpu.memory_space<vmem>>, vector<10x128xf32>
    %c0_1 = arith.constant 0 : index
    %c0_2 = arith.constant 0 : index
    %1 = vector.load %arg2[%c0_1, %c0_2] : memref<3x10xf32, #tpu.memory_space<vmem>>, vector<3x10xf32>
    %c0_3 = arith.constant 0 : index
    %c0_4 = arith.constant 0 : index
    %2 = vector.load %arg3[%c0_3, %c0_4] : memref<3x1xf32, #tpu.memory_space<vmem>>, vector<3x1xf32>
    %3 = vector.shape_cast %2 : vector<3x1xf32> to vector<3x1xf32>
    %4 = vector.broadcast %3 : vector<3x1xf32> to vector<3x128xf32>
    %5 = vector.extract_strided_slice %1 {offsets = [0, 0], sizes = [3, 1], strides = [1, 1]} : vector<3x10xf32> to vector<3x1xf32>
    %6 = vector.extract_strided_slice %0 {offsets = [0, 0], sizes = [1, 128], strides = [1, 1]} : vector<10x128xf32> to vector<1x128xf32>
    %7 = vector.broadcast %5 : vector<3x1xf32> to vector<3x128xf32>
    %8 = vector.broadcast %6 : vector<1x128xf32> to vector<3x128xf32>
    %9 = arith.mulf %7, %8 : vector<3x128xf32>
    %10 = arith.addf %4, %9 : vector<3x128xf32>
    %11 = vector.extract_strided_slice %1 {offsets = [0, 1], sizes = [3, 1], strides = [1, 1]} : vector<3x10xf32> to vector<3x1xf32>
    %12 = vector.extract_strided_slice %0 {offsets = [1, 0], sizes = [1, 128], strides = [1, 1]} : vector<10x128xf32> to vector<1x128xf32>
    %13 = vector.broadcast %11 : vector<3x1xf32> to vector<3x128xf32>
    %14 = vector.broadcast %12 : vector<1x128xf32> to vector<3x128xf32>
    %15 = arith.mulf %13, %14 : vector<3x128xf32>
    %16 = arith.addf %10, %15 : vector<3x128xf32>
    %17 = vector.extract_strided_slice %1 {offsets = [0, 2], sizes = [3, 1], strides = [1, 1]} : vector<3x10xf32> to vector<3x1xf32>
    %18 = vector.extract_strided_slice %0 {offsets = [2, 0], sizes = [1, 128], strides = [1, 1]} : vector<10x128xf32> to vector<1x128xf32>
    %19 = vector.broadcast %17 : vector<3x1xf32> to vector<3x128xf32>
    %20 = vector.broadcast %18 : vector<1x128xf32> to vector<3x128xf32>
    %21 = arith.mulf %19, %20 : vector<3x128xf32>
    %22 = arith.addf %16, %21 : vector<3x128xf32>
    %23 = vector.extract_strided_slice %1 {offsets = [0, 3], sizes = [3, 1], strides = [1, 1]} : vector<3x10xf32> to vector<3x1xf32>
    %24 = vector.extract_strided_slice %0 {offsets = [3, 0], sizes = [1, 128], strides = [1, 1]} : vector<10x128xf32> to vector<1x128xf32>
    %25 = vector.broadcast %23 : vector<3x1xf32> to vector<3x128xf32>
    %26 = vector.broadcast %24 : vector<1x128xf32> to vector<3x128xf32>
    %27 = arith.mulf %25, %26 : vector<3x128xf32>
    %28 = arith.addf %22, %27 : vector<3x128xf32>
    %29 = vector.extract_strided_slice %1 {offsets = [0, 4], sizes = [3, 1], strides = [1, 1]} : vector<3x10xf32> to vector<3x1xf32>
    %30 = vector.extract_strided_slice %0 {offsets = [4, 0], sizes = [1, 128], strides = [1, 1]} : vector<10x128xf32> to vector<1x128xf32>
    %31 = vector.broadcast %29 : vector<3x1xf32> to vector<3x128xf32>
    %32 = vector.broadcast %30 : vector<1x128xf32> to vector<3x128xf32>
    %33 = arith.mulf %31, %32 : vector<3x128xf32>
    %34 = arith.addf %28, %33 : vector<3x128xf32>
    %35 = vector.extract_strided_slice %1 {offsets = [0, 5], sizes = [3, 1], strides = [1, 1]} : vector<3x10xf32> to vector<3x1xf32>
    %36 = vector.extract_strided_slice %0 {offsets = [5, 0], sizes = [1, 128], strides = [1, 1]} : vector<10x128xf32> to vector<1x128xf32>
    %37 = vector.broadcast %35 : vector<3x1xf32> to vector<3x128xf32>
    %38 = vector.broadcast %36 : vector<1x128xf32> to vector<3x128xf32>
    %39 = arith.mulf %37, %38 : vector<3x128xf32>
    %40 = arith.addf %34, %39 : vector<3x128xf32>
    %41 = vector.extract_strided_slice %1 {offsets = [0, 6], sizes = [3, 1], strides = [1, 1]} : vector<3x10xf32> to vector<3x1xf32>
    %42 = vector.extract_strided_slice %0 {offsets = [6, 0], sizes = [1, 128], strides = [1, 1]} : vector<10x128xf32> to vector<1x128xf32>
    %43 = vector.broadcast %41 : vector<3x1xf32> to vector<3x128xf32>
    %44 = vector.broadcast %42 : vector<1x128xf32> to vector<3x128xf32>
    %45 = arith.mulf %43, %44 : vector<3x128xf32>
    %46 = arith.addf %40, %45 : vector<3x128xf32>
    %47 = vector.extract_strided_slice %1 {offsets = [0, 7], sizes = [3, 1], strides = [1, 1]} : vector<3x10xf32> to vector<3x1xf32>
    %48 = vector.extract_strided_slice %0 {offsets = [7, 0], sizes = [1, 128], strides = [1, 1]} : vector<10x128xf32> to vector<1x128xf32>
    %49 = vector.broadcast %47 : vector<3x1xf32> to vector<3x128xf32>
    %50 = vector.broadcast %48 : vector<1x128xf32> to vector<3x128xf32>
    %51 = arith.mulf %49, %50 : vector<3x128xf32>
    %52 = arith.addf %46, %51 : vector<3x128xf32>
    %53 = vector.extract_strided_slice %1 {offsets = [0, 8], sizes = [3, 1], strides = [1, 1]} : vector<3x10xf32> to vector<3x1xf32>
    %54 = vector.extract_strided_slice %0 {offsets = [8, 0], sizes = [1, 128], strides = [1, 1]} : vector<10x128xf32> to vector<1x128xf32>
    %55 = vector.broadcast %53 : vector<3x1xf32> to vector<3x128xf32>
    %56 = vector.broadcast %54 : vector<1x128xf32> to vector<3x128xf32>
    %57 = arith.mulf %55, %56 : vector<3x128xf32>
    %58 = arith.addf %52, %57 : vector<3x128xf32>
    %59 = vector.extract_strided_slice %1 {offsets = [0, 9], sizes = [3, 1], strides = [1, 1]} : vector<3x10xf32> to vector<3x1xf32>
    %60 = vector.extract_strided_slice %0 {offsets = [9, 0], sizes = [1, 128], strides = [1, 1]} : vector<10x128xf32> to vector<1x128xf32>
    %61 = vector.broadcast %59 : vector<3x1xf32> to vector<3x128xf32>
    %62 = vector.broadcast %60 : vector<1x128xf32> to vector<3x128xf32>
    %63 = arith.mulf %61, %62 : vector<3x128xf32>
    %64 = arith.addf %58, %63 : vector<3x128xf32>
    %cst = arith.constant 0.000000e+00 : f32
    %65 = vector.broadcast %cst : f32 to vector<3x128xf32>
    %66 = arith.maximumf %64, %65 : vector<3x128xf32>
    %c0_5 = arith.constant 0 : index
    %67 = memref.load %arg5[%c0_5] : memref<1xf32, #tpu.memory_space<smem>>
    %68 = vector.broadcast %67 : f32 to vector<1x128xf32>
    %69 = vector.extract_strided_slice %66 {offsets = [0, 0], sizes = [1, 128], strides = [1, 1]} : vector<3x128xf32> to vector<1x128xf32>
    %c0_6 = arith.constant 0 : index
    %70 = memref.load %arg4[%c0_6] : memref<3xf32, #tpu.memory_space<smem>>
    %71 = vector.broadcast %70 : f32 to vector<1x128xf32>
    %72 = arith.mulf %69, %71 : vector<1x128xf32>
    %73 = arith.addf %68, %72 : vector<1x128xf32>
    %74 = vector.extract_strided_slice %66 {offsets = [1, 0], sizes = [1, 128], strides = [1, 1]} : vector<3x128xf32> to vector<1x128xf32>
    %c1 = arith.constant 1 : index
    %75 = memref.load %arg4[%c1] : memref<3xf32, #tpu.memory_space<smem>>
    %76 = vector.broadcast %75 : f32 to vector<1x128xf32>
    %77 = arith.mulf %74, %76 : vector<1x128xf32>
    %78 = arith.addf %73, %77 : vector<1x128xf32>
    %79 = vector.extract_strided_slice %66 {offsets = [2, 0], sizes = [1, 128], strides = [1, 1]} : vector<3x128xf32> to vector<1x128xf32>
    %c2 = arith.constant 2 : index
    %80 = memref.load %arg4[%c2] : memref<3xf32, #tpu.memory_space<smem>>
    %81 = vector.broadcast %80 : f32 to vector<1x128xf32>
    %82 = arith.mulf %79, %81 : vector<1x128xf32>
    %83 = arith.addf %78, %82 : vector<1x128xf32>
    %c0_7 = arith.constant 0 : index
    %c0_8 = arith.constant 0 : index
    %84 = vector.load %arg6[%c0_7, %c0_8] : memref<1x128xf32, #tpu.memory_space<vmem>>, vector<1x128xf32>
    tpu.vector_store %arg6[%c0_7, %c0_8], %83 {strides = array<i32>} : memref<1x128xf32, #tpu.memory_space<vmem>>, vector<1x128xf32>,
    return
  }
  func.func @transform_0(%arg0: i32) -> (i32, i32) {
    %c0_i32 = arith.constant 0 : i32
    %c0_i32_0 = arith.constant 0 : i32
    return %c0_i32, %arg0 : i32, i32
  }
  func.func @transform_1(%arg0: i32) -> (i32, i32) {
    %c0_i32 = arith.constant 0 : i32
    %c0_i32_0 = arith.constant 0 : i32
    %c0_i32_1 = arith.constant 0 : i32
    return %c0_i32, %c0_i32_0 : i32, i32
  }
  func.func @transform_2(%arg0: i32) -> (i32, i32) {
    %c0_i32 = arith.constant 0 : i32
    %c0_i32_0 = arith.constant 0 : i32
    %c0_i32_1 = arith.constant 0 : i32
    return %c0_i32, %c0_i32_0 : i32, i32
  }
  func.func @transform_3(%arg0: i32) -> i32 {
    %c0_i32 = arith.constant 0 : i32
    %c0_i32_0 = arith.constant 0 : i32
    return %c0_i32 : i32
  }
  func.func @transform_4(%arg0: i32) -> i32 {
    %c0_i32 = arith.constant 0 : i32
    %c0_i32_0 = arith.constant 0 : i32
    return %c0_i32 : i32
  }
  func.func @transform_5(%arg0: i32) -> (i32, i32) {
    %c0_i32 = arith.constant 0 : i32
    %c0_i32_0 = arith.constant 0 : i32
    return %c0_i32, %arg0 : i32, i32
  }
}

</mosaic_0001>

<bundles_post_ra>
// kernel: tpu_custom_call.1
= control target key start
LH: loop header
LB: loop body
LE: loop exit
PB: predicated region body
PF: predicated region fallthrough
CT: control target
= control target key end

     0   :  { %s860_s0 = inlined_call_operand.hbm [shape: f32[10,384], index: 0, kind: input, shape index: {}]   ;;  %s861_s1 = inlined_call_operand.vmem [shape: f32[3,10], index: 1, kind: input, shape index: {}]   ;;  %s862_s2 = inlined_call_operand.vmem [shape: f32[3,1], index: 2, kind: input, shape index: {}]   ;;  %s863_s3 = inlined_call_operand.vmem [shape: f32[3], index: 3, kind: input, shape index: {}]   ;;  %s864_s4 = inlined_call_operand.<no memory space> [shape: f32[1], index: 4, kind: input, shape index: {}]   ;;  %s865_s5 = inlined_call_operand.hbm [shape: f32[1,384], index: 5, kind: output, shape index: {}]  }
   0x1   :  { %866 = sst [smem:[#allocation12_spill]] %s863_s3 }
   0x2   :  { %10 = sst [smem:[#allocation2]] %s864_s4 }
   0x3   :  { %11 = vsyncpa [#allocation4], 0 }
   0x4   :  { %13 = vsyncpa [#allocation4 + $0x1], 0 }
   0x5   :  { %14 = vsyncpa [#allocation6], 0 }
   0x6   :  { %15 = vsyncpa [#allocation5], 0 }
   0x7   :  { %17 = vsyncpa [#allocation5 + $0x1], 0  ;;  %s709_s20 = smov 0   ;;  %s711_s21 = smov 0  }
   0x8   :  { %s713_s22 = smov 0   ;;  %s715_s23 = smov 0  }
   0x9 LB: > { %s730_s4 = sadd.s32 4294967295, %s660_s23   ;;  %s451_s24 = sadd.s32 4294967294, %s660_s23   ;;  %s660_s23 = sphi %s715_s23, %s877_s23   ;;  %s656_s22 = sphi %s713_s22, %s876_s22   ;;  %s652_s21 = sphi %s711_s21, %s875_s21   ;;  %s648_s20 = sphi %s709_s20, %s874_s20  }
   0xa   : > { %s734_s25 = sadd.s32 1, %s660_s23   ;;  %s30_s26 = sadd.s32 1, %s656_s22 }
   0xb   : > { %s27_s27 = ssub.s32 %s660_s23, %s734_s25  ;;  %p37_p0 = scmp.ne.s32.totalorder %s656_s22, %s652_s21 }
   0xc   : > { %p28_p1 = scmp.eq.s32.totalorder %s27_s27, 0  ;;  %p38_p2 = scmp.eq.s32.totalorder %s660_s23, 0 }
   0xd   : > { %p43_p3 = scmp.ne.s32.totalorder %s652_s21, %s648_s20  ;;  %p44_p4 = scmp.eq.s32.totalorder %s730_s4, 0 }
   0xe   : > { %s746_s28 = scalar_select %p28_p1, %s656_s22, %s30_s26  }
   0xf   : > { %p748_p5 = por %p38_p2, %p37_p0  ;;  %p754_p6 = por %p44_p4, %p43_p3 }
  0x10   : > { %p151_p7 = scmp.eq.s32.totalorder %s730_s4, 2  ;;  %p157_p8 = scmp.eq.s32.totalorder %s451_s24, 2 }
  0x11   : > { %p452_p9 = scmp.ge.s32.totalorder %s660_s23, 1  ;;  %p164_p10 = scmp.lt.s32.totalorder %s660_s23, 4 }
  0x12   : > { %p761_p11 = por %p151_p7, %p37_p0  ;;  %p765_p12 = por %p157_p8, %p43_p3 }
  0x13   : > { %p769_p13 = pnand %p452_p9, %p164_p10  ;;  %s872_s3 = sld [smem:[#allocation12_spill]] }
  0x14   : > { %p485_p0 = scmp.lt.s32.totalorder %s660_s23, 3  ;;  %s196_s12 = sand.u32 1, %s656_s22  }
  0x15   : > { %p472_p1 = pneg %p769_p13  ;;  %s455_s14 = sshll.u32 %s196_s12, 4 }
  0x16   : > { %p784_p3 = pnand %p485_p0, %p748_p5  ;;  %s662_s15 = smov [#allocation7]  }
  0x17   : > { %p473_p2 = pnand %p472_p1, %p44_p4  ;;  %s456_s16 = sshll.u32 %s660_s23, 3 }
  0x18   : > { %s200_s17 = scalar_lea.vmem [#allocation3], %s455_s14  ;;  %s204_s26 = scalar_lea.hbm %s860_s0, %s456_s16 }
  0x19   : > { %s182_s11 = sshll.u32 %s872_s3, 4  ;;  %s207_s18 = sshll.u32 %s200_s17, 4  ;;  %s183_s11 = int_to_ptr.vmem [resolvable:$true] %s182_s11  ;;  %s208_s18 = int_to_ptr.vmem [resolvable:$true] %s207_s18 }
  0x1a   : > { %475 = dma.vmem_to_smem (!%p473_p2), %s183_s11, 16, %s662_s15, [#allocation6]  }
  0x1b   : > { %s205_s27 = sshll.u32 %s204_s26, 4  ;;  %s197_s9 = scalar_lea.sflag [#allocation4], %s196_s12  ;;  %s206_s27 = int_to_ptr.hbm [resolvable:$true] %s205_s27 }
  0x1c   : > { %s560_s29 = sshra.s32 %s206_s27, 4  ;;  %p564_p7 = pneg %p784_p3  ;;  %s561_s29 = int_to_ptr.hbm [resolvable:$true] %s560_s29 }
  0x1d   : > { %s562_s10 = scalar_lea.hbm %s561_s29, 16  ;;  %s567_s14 = scalar_lea.hbm %s860_s0, 48 }
  0x1e   : > { %p563_p5 = scmp.ne.s32.totalorder %s561_s29, %s562_s10  ;;  %p568_p10 = scmp.lt.s32.totalorder %s561_s29, %s860_s0 }
  0x1f   : > { %p569_p1 = scmp.lt.s32.totalorder %s567_s14, %s562_s10 }
  0x20   : > { %p565_p8 = pnand %p564_p7, %p563_p5 }
  0x21   : > { %p570_p0 = por %p569_p1, %p568_p10 }
  0x22   : > { %p566_p9 = pneg %p565_p8 }
  0x24   : > { %p571_p2 = pnand %p570_p0, %p566_p9 }
  0x26   : > { %574 = shalt.err (!%p571_p2)
}
  0x27   : > { %s663_s12 = smov 384   ;;  %s664_s16 = smov 128  }
  0x28   : > { %s665_s19 = smov 8   ;;  %219 = sbr.rel (%p769_p13) target bundleno = 213 (0xd5), region = 40 }
  0x29   : > { %479 = dma.hbm_to_vmem [thread:$0]  (!%p784_p3), %s206_s27, 256, %s208_s18, %s197_s9, %s663_s12, %s664_s16, %s665_s19  }
  0x2a   : > { %s805_s24 = sand.u32 (!%p769_p13), 1, %s652_s21  }
  0x2b   : > { %s458_s3 = sshll.u32 (!%p769_p13), %s805_s24, 4  ;;  %s222_s26 = scalar_lea.sflag (!%p769_p13), [#allocation4], %s805_s24 }
  0x2c   : > { %s809_s29 = scalar_lea.vmem (!%p769_p13), [#allocation3], %s458_s3 }
  0x2d   : > { %635 = dma.done.wait (%p754_p6), %s222_s26, 256  }
  0x2e   : > { %637 = vsyncadd (%p754_p6), %s222_s26, 4294967040 }
  0x2f   : > { %639 = dma.done.wait (%p44_p4), [#allocation6], 16  }
  0x30   : > { %641 = vsyncadd (%p44_p4), [#allocation6], 4294967280 }
  0x31   : > { %236 = sfence }
  0x32   : > { %v260_v0 = vld [vmem:[%s861_s1] sm:$0x7]  ;;  %v666_v1 = vmov 1   ;;  %v667_v2 = vmov 0   ;;  %v668_v3 = vmov 3   ;;  %v669_v5 = vmov 2   ;;  %s369_s17 = scalar_lea.hbm %s865_s5, %s730_s4 }
  0x33   : > { %535 = vset.pattern.permute.xlu1 %v666_v1  ;;  %534 = vset.pattern.permute.xlu0 %v667_v2  ;;  %v261_v4 = vld [vmem:[%s862_s2] sm:$0x7]  ;;  %v670_v6 = vmov 4   ;;  %v671_v7 = vmov 5   ;;  %v672_v8 = vmov 6   ;;  %v673_v9 = vmov 7  }
  0x34   : > { %276 = vperm.xlu1 %535, %v260_v0   ;;  %269 = vperm.xlu0 %534, %v260_v0   ;;  %v674_v10 = vmov 9   ;;  %v675_v11 = vmov 8   ;;  %v258_v15 = vld [vmem:[%s809_s29] sm:$0xff]  ;;  %v259_v43 = vld [vmem:[%s809_s29 + $0x8] sm:$0x3]  ;;  %s341_s27 = sld [smem:[#allocation7]] }
  0x35   : > { %537 = vset.pattern.permute.xlu2 %v668_v3  ;;  %v272_v16 = vperm.slane %v258_v15, 0  ;;  %v279_v17 = vperm.slane %v258_v15, 1  ;;  %v286_v19 = vperm.slane %v258_v15, 2  ;;  %v293_v23 = vperm.slane %v258_v15, 3  ;;  %s460_s9 = sld [smem:[#allocation7 + $0x1]]  ;;  %s257_s12 = scalar_lea.vmem [#allocation8], %s805_s24 }
  0x36   : > { %290 = vperm.xlu2 %537, %v260_v0   ;;  %v300_v28 = vperm.slane %v258_v15, 4  ;;  %v307_v31 = vperm.slane %v258_v15, 5  ;;  %v314_v35 = vperm.slane %v258_v15, 6  ;;  %v321_v42 = vperm.slane %v258_v15, 7  ;;  %s461_s10 = sld [smem:[#allocation7 + $0x2]]  ;;  %s371_s16 = sshll.u32 %s257_s12, 4  ;;  %s372_s16 = int_to_ptr.vmem [resolvable:$true] %s371_s16 }
  0x37   : > { %v328_v46 = vperm.slane %v259_v43, 0  ;;  %v335_v47 = vperm.slane %v259_v43, 1  ;;  %s339_s11 = sld [smem:[#allocation2]]  ;;  %s373_s19 = sshll.u32 %s369_s17, 4  ;;  %s374_s19 = int_to_ptr.hbm [resolvable:$true] %s373_s19 }
  0x38   : > { %s361_s3 = scalar_lea.sflag [#allocation5], %s805_s24  ;;  %s604_s26 = sshra.s32 %s374_s19, 4  ;;  %s605_s26 = int_to_ptr.hbm [resolvable:$true] %s604_s26 }
  0x39   : > { %s606_s29 = scalar_lea.hbm %s605_s26, 1  ;;  %s610_s13 = scalar_lea.hbm %s865_s5, 3 }
  0x3a   : > { %v342_v55 = vstv %s341_s27  ;;  %p607_p4 = scmp.ne.s32.totalorder %s605_s26, %s606_s29  ;;  %p611_p3 = scmp.lt.s32.totalorder %s605_s26, %s865_s5 }
  0x3b   : > { %v346_v56 = vstv %s460_s9  ;;  %p612_p5 = scmp.lt.s32.totalorder %s610_s13, %s606_s29 }
  0x3c   : > { %536 = vset.pattern.permute.xlu1 %v669_v5  ;;  %264 = vperm.xlu0 %534, %v261_v4   ;;  %v353_v57 = vstv %s461_s10  ;;  %p608_p6 = pnand %p607_p4, %p761_p11 }
  0x3d   : > { %283 = vperm.xlu1 %536, %v260_v0   ;;  %v340_v59 = vstv %s339_s11  ;;  %p613_p7 = por %p612_p5, %p611_p3 }
  0x3e   : > { %538 = vset.pattern.permute.xlu2 %v670_v6  ;;  %p609_p13 = pneg %p608_p6 }
  0x3f   : > { %297 = vperm.xlu2 %538, %v260_v0  }
  0x40   : > { %p614_p8 = pnand %p613_p7, %p609_p13 }
  0x44   : > { %539 = vset.pattern.permute.xlu0 %v671_v7 }
  0x45   : > { %540 = vset.pattern.permute.xlu1 %v672_v8  ;;  %304 = vperm.xlu0 %539, %v260_v0  }
  0x46   : > { %311 = vperm.xlu1 %540, %v260_v0  }
  0x47   : > { %541 = vset.pattern.permute.xlu2 %v673_v9 }
  0x48   : > { %318 = vperm.xlu2 %541, %v260_v0  }
  0x4d   : > { %544 = vset.pattern.permute.xlu0 %v674_v10 }
  0x4e   : > { %542 = vset.pattern.permute.xlu1 %v675_v11 }
  0x4f   : > { %325 = vperm.xlu1 %542, %v260_v0  }
  0x50   : > { %543 = vset.pattern.permute.xlu2 %v674_v10 }
  0x51   : > { %332 = vperm.xlu2 %543, %v260_v0  }
  0x90   : > { %v291_v12 = vpop.permute.xlu2 %290 }
  0x91   : > { %v294_v29 = vmul.f32 %v293_v23, %v291_v12 }
  0x99   : > { %v298_v18 = vpop.permute.xlu2 %297 }
  0x9a   : > { %v301_v33 = vmul.f32 %v300_v28, %v298_v18 }
  0xa2   : > { %v319_v34 = vpop.permute.xlu2 %318 }
  0xa3   : > { %v322_v45 = vmul.f32 %v321_v42, %v319_v34 }
  0xa6   : > { %v277_v13 = vpop.permute.xlu1 %276  ;;  %v270_v14 = vpop.permute.xlu0 %269 }
  0xa7   : > { %v273_v20 = vmul.f32 %v272_v16, %v270_v14  ;;  %v280_v22 = vmul.f32 %v279_v17, %v277_v13 }
  0xab   : > { %v333_v48 = vpop.permute.xlu2 %332 }
  0xac   : > { %v336_v52 = vmul.f32 %v335_v47, %v333_v48 }
  0xae   : > { %v265_v21 = vpop.permute.xlu0 %264 }
  0xaf   : > { %v274_v24 = vadd.f32 %v273_v20, %v265_v21  ;;  %v284_v25 = vpop.permute.xlu1 %283 }
  0xb0   : > { %v287_v26 = vmul.f32 %v286_v19, %v284_v25 }
  0xb1   : > { %v281_v27 = vadd.f32 %v280_v22, %v274_v24 }
  0xb3   : > { %v288_v30 = vadd.f32 %v287_v26, %v281_v27 }
  0xb5   : > { %v295_v32 = vadd.f32 %v294_v29, %v288_v30 }
  0xb7   : > { %v302_v36 = vadd.f32 %v301_v33, %v295_v32  ;;  %v305_v37 = vpop.permute.xlu0 %304 }
  0xb8   : > { %v308_v38 = vmul.f32 %v307_v31, %v305_v37  ;;  %v312_v39 = vpop.permute.xlu1 %311 }
  0xb9   : > { %v315_v41 = vmul.f32 %v314_v35, %v312_v39 }
  0xba   : > { %v309_v40 = vadd.f32 %v308_v38, %v302_v36 }
  0xbc   : > { %v316_v44 = vadd.f32 %v315_v41, %v309_v40 }
  0xbe   : > { %v323_v50 = vadd.f32 %v322_v45, %v316_v44 }
  0xc1   : > { %v326_v49 = vpop.permute.xlu1 %325 }
  0xc2   : > { %v329_v51 = vmul.f32 %v328_v46, %v326_v49 }
  0xc4   : > { %v330_v53 = vadd.f32 %v329_v51, %v323_v50 }
  0xc6   : > { %v337_v54 = vadd.f32 %v336_v52, %v330_v53 }
  0xc8   : > { %v338_v58 = vmax.f32 %v337_v54, 0.0 }
  0xca   : > { %v343_v60 = vmul.f32 %v342_v55, %v338_v58  ;;  %v347_v61 = vmul.f32 %v346_v56, %v338_v58  ;;  %v354_v62 = vmul.f32 %v353_v57, %v338_v58 }
  0xcc   : > { %v349_v63 = vrot.slane %v347_v61, 1  ;;  %v344_v0 = vadd.f32 %v343_v60, %v340_v59  ;;  %v356_v2 = vrot.slane %v354_v62, 2 }
  0xce   : > { %v351_v1 = vadd.f32 %v349_v63, %v344_v0 }
  0xd0   : > { %v358_v3 = vadd.f32 %v356_v2, %v351_v1 }
  0xd2   : > { %359 = vst [vmem:[%s257_s12] sm:$0x1] %v358_v3 }
  0xd3   : > { %617 = shalt.err (!%p614_p8)
}
  0xd4   : > { %470 = dma.vmem_to_hbm [thread:$0]  (%p761_p11), %s372_s16, 16, %s374_s19, %s361_s3  }
  0xd5 PF: > { %p487_p9 = scmp.ge.s32.totalorder %s660_s23, 2  ;;  %s385_s24 = sand.u32 1, %s648_s20  }
  0xd6   : > { %s386_s27 = scalar_lea.sflag [#allocation5], %s385_s24 }
  0xd7   : > { %p481_p10 = pnand %p487_p9, %p765_p12 }
  0xd9   : > { %p482_p1 = pneg %p481_p10 }
  0xdb   : > { %643 = dma.done.wait (%p482_p1), %s386_s27, 16  }
  0xdc   : > { %645 = vsyncadd (%p482_p1), %s386_s27, 4294967280  ;;  %p20_p0 = scmp.ge.s32.totalorder %s734_s25, 5   ;;  %s874_s20 = smov %s652_s21 }
  0xdd   : > { %s875_s21 = smov %s656_s22  ;;  %s876_s22 = smov %s746_s28 }
  0xde   : > { %s877_s23 = smov %s734_s25  ;;  %22 = sbr.rel (!%p20_p0) target bundleno = 9 (0x9), region = 90 }
  0xe3   :  { %391 = vsyncpa [#allocation4], 1 }
  0xe4   :  { %393 = vsyncpa [#allocation4 + $0x1], 1 }
  0xe5   :  { %394 = vsyncpa [#allocation5], 1 }
  0xe6   :  { %396 = vsyncpa [#allocation5 + $0x1], 1 }
  0xe7   :  { %397 = vsyncpa [#allocation6], 1 }
  0xe8   :  { %399 = vsyncpa [#allocation6 + $0x1], 1 }

</bundles_post_ra>
